<compile_context>
chip_gen: v7x
topology: tpu7x:2x2x1
jax: 0.10.0
libtpu: 0.0.40
codegen_flags: <defaults>
</compile_context>

<pallas_src>
import jax
import jax.numpy as jnp
import numpy as np
from jax.experimental import pallas as pl
from jax.experimental.pallas import tpu as pltpu

_LANE = 128
_SUBLANE = 8


def _round_up(n, m):
    return ((n + m - 1) // m) * m


def _make_mlp_kernel(num_hidden):
    """Fused MLP: [bf16 matmul -> folded-BN shift -> ReLU] * H -> transposed 1-wide head."""

    def kernel(*refs):
        x_ref = refs[0]            # (tb, d_in_pad) bf16
        bo_ref = refs[-2]          # (1,) f32 output bias in SMEM
        out_ref = refs[-1]         # (1, 1, tb) f32
        p = refs[1:-2]             # (W_1, shift_1, ..., W_H, shift_H, W_out)

        h = x_ref[...].astype(jnp.float32)                       # f32 activations
        for l in range(num_hidden):                              # static unroll
            w_ref, t_ref = p[2 * l], p[2 * l + 1]
            # MXU bf16 matmul with f32 accumulation (BN scale folded into W columns).
            z = jnp.dot(h.astype(jnp.bfloat16), w_ref[...],
                        preferred_element_type=jnp.float32)
            # Folded-BN shift + ReLU on the VPU, kept in f32 (v5e has no bf16 VPU).
            h = jnp.maximum(z + t_ref[...], 0.0)

        wo_ref = p[2 * num_hidden]                               # (8, d_last_pad) bf16, row 0 real
        # Final (out_dim == 1) layer written transposed so batch lands on lanes:
        # XLU transpose of the last activation (f32, tile-aligned), then an
        # (8, d) @ (d, tb) MXU matmul; keep row 0 only -> (1, tb).
        ht = h.T.astype(jnp.bfloat16)                            # (d_last_pad, tb)
        res = jnp.dot(wo_ref[...], ht, preferred_element_type=jnp.float32)
        out_ref[0] = res[0:1, :] + bo_ref[0]

    return kernel


def mlp_forward(x, hidden_params, out_params, *, eps=1e-5, block_b=512):
    """Fused MLP forward (eval mode).

    x:             (B, D_in) float
    hidden_params: list of (W (d_out,d_in), b (d_out,), gamma, beta, running_mean,
                    running_var) per hidden layer
    out_params:    (W_out (1, d_last), b_out (1,))
    """
    x = jnp.asarray(x, jnp.float32)
    B, d_in = x.shape
    num_hidden = len(hidden_params)

    d_in_pad = _round_up(d_in, _LANE)

    # ---- fold eval-mode BN into the weights (scale -> W columns, shift standalone) ----
    kernel_args = []
    d_prev, d_prev_pad = d_in, d_in_pad
    for (W, b, gamma, beta, mean, var) in hidden_params:
        W = jnp.asarray(W, jnp.float32)                          # (d_out, d_prev)
        b = jnp.asarray(b, jnp.float32)
        gamma = jnp.asarray(gamma, jnp.float32)
        beta = jnp.asarray(beta, jnp.float32)
        mean = jnp.asarray(mean, jnp.float32)
        var = jnp.asarray(var, jnp.float32)
        d_out = W.shape[0]
        d_out_pad = _round_up(d_out, _LANE)

        scale = gamma / jnp.sqrt(var + eps)                      # (d_out,)
        shift = scale * (b - mean) + beta                        # (d_out,)
        W_folded = W.T * scale[None, :]                          # (d_prev, d_out), scale folded

        W_pad = jnp.zeros((d_prev_pad, d_out_pad), jnp.float32)
        W_pad = W_pad.at[:d_prev, :d_out].set(W_folded).astype(jnp.bfloat16)
        t_pad = jnp.zeros((1, d_out_pad), jnp.float32).at[:, :d_out].set(shift)
        kernel_args += [W_pad, t_pad]
        d_prev, d_prev_pad = d_out, d_out_pad

    # ---- final linear (module fixes out_dim = 1); row form, sublane-padded to 8 ----
    W_o = jnp.asarray(out_params[0], jnp.float32)                # (1, d_prev)
    b_o = jnp.asarray(out_params[1], jnp.float32).reshape(-1)    # (1,)
    assert W_o.shape[0] == 1, "MultiLayerPerceptron output layer is Linear(d, 1)"
    wo_pad = jnp.zeros((_SUBLANE, d_prev_pad), jnp.float32)
    wo_pad = wo_pad.at[0, :d_prev].set(W_o[0]).astype(jnp.bfloat16)
    kernel_args.append(wo_pad)

    # ---- batch tiling: large tiles, but >= 2 tiles when possible (v7x dual TC) ----
    tb = min(block_b, B)
    if B > _SUBLANE and tb >= B:
        tb = (B + 1) // 2
    tb = max(_SUBLANE, (tb // _SUBLANE) * _SUBLANE)
    num_tiles = -(-B // tb)
    tb = _round_up(-(-B // num_tiles), _SUBLANE)                 # rebalance -> minimal padding
    b_rows = tb * num_tiles

    x_bf = x.astype(jnp.bfloat16)                                # halve input HBM traffic
    if b_rows != B or d_in_pad != d_in:
        x_bf = jnp.pad(x_bf, ((0, b_rows - B), (0, d_in_pad - d_in)))

    # ---- VMEM budget: params x1 (Buffered(1)), x/out x2, working activations ----
    param_bytes = sum(int(np.prod(a.shape)) * a.dtype.itemsize for a in kernel_args)
    io_bytes = 2 * (tb * d_in_pad * 2 + tb * 4)
    max_d_pad = max([d_in_pad] + [a.shape[-1] for a in kernel_args])
    work_bytes = 6 * tb * max_d_pad * 4
    vmem_limit = int(min(64 << 20, max(4 << 20, 2 * (param_bytes + io_bytes + work_bytes))))

    kernel_fn = _make_mlp_kernel(num_hidden)
    out_shape = jax.ShapeDtypeStruct((num_tiles, 1, tb), jnp.float32)
    out_spec = pl.BlockSpec((1, 1, tb), lambda i: (i, 0, 0))
    x_spec = pl.BlockSpec((tb, d_in_pad), lambda i: (i, 0))
    smem_spec = pl.BlockSpec(memory_space=pltpu.MemorySpace.SMEM)

    def run(single_buffer_params):
        def p_spec(a):
            if single_buffer_params:
                return pl.BlockSpec(a.shape, lambda i: (0, 0),
                                    pipeline_mode=pl.Buffered(1))
            return pl.BlockSpec(a.shape, lambda i: (0, 0))

        in_specs = [x_spec] + [p_spec(a) for a in kernel_args] + [smem_spec]
        return pl.pallas_call(
            kernel_fn,
            out_shape=out_shape,
            grid=(num_tiles,),
            in_specs=in_specs,
            out_specs=out_spec,
            compiler_params=pltpu.CompilerParams(
                dimension_semantics=("parallel",),   # batch tiles split across TCs (v7x)
                vmem_limit_bytes=vmem_limit,
            ),
        )(x_bf, *kernel_args, b_o)

    try:
        out = run(True)
    except Exception:
        # Fallback for jax versions that reject single-buffered params (Buffered(1)).
        out = run(False)

    # (num_tiles, 1, tb) -> (B, 1); tile i holds batch rows [i*tb, (i+1)*tb).
    return out.reshape(-1)[:B].reshape(B, 1)


if __name__ == "__main__":
    key = jax.random.PRNGKey(0)

    # Small config consistent with the module.
    batch = 64
    input_dim = 32
    embed_dims = [64, 32]
    dropout = 0.2          # eval mode -> identity
    eps = 1e-5

    ks = iter(jax.random.split(key, 32))
    x = jax.random.normal(next(ks), (batch, input_dim), jnp.float32)

    hidden_params = []
    d = input_dim
    for h in embed_dims:
        W = 0.1 * jax.random.normal(next(ks), (h, d), jnp.float32)
        b = 0.1 * jax.random.normal(next(ks), (h,), jnp.float32)
        gamma = 1.0 + 0.1 * jax.random.normal(next(ks), (h,), jnp.float32)
        beta = 0.1 * jax.random.normal(next(ks), (h,), jnp.float32)
        mean = 0.1 * jax.random.normal(next(ks), (h,), jnp.float32)
        var = jnp.abs(jax.random.normal(next(ks), (h,), jnp.float32)) + 0.5
        hidden_params.append((W, b, gamma, beta, mean, var))
        d = h

    W_o = 0.1 * jax.random.normal(next(ks), (1, d), jnp.float32)
    b_o = 0.1 * jax.random.normal(next(ks), (1,), jnp.float32)

    out = mlp_forward(x, hidden_params, (W_o, b_o), eps=eps)
    out = jax.block_until_ready(out)

    # Pure-JAX f32 reference (eval-mode forward).
    ref = x
    for (W, b, gamma, beta, mean, var) in hidden_params:
        z = ref @ W.T + b
        z = gamma * (z - mean) / jnp.sqrt(var + eps) + beta
        ref = jnp.maximum(z, 0.0)
    ref = ref @ W_o.T + b_o

    assert out.shape == (batch, 1)
    # bf16 matmul inputs (f32 accumulation) -> relaxed tolerance vs f32 reference.
    np.testing.assert_allclose(np.asarray(out), np.asarray(ref), rtol=2e-2, atol=2e-2)
    print("KERNEL_OK")
</pallas_src>

<mosaic_0001>
module attributes {stable_mosaic.version = 11 : i64} {
  func.func @kernel(%arg0: i32, %arg1: memref<32x128xbf16, #tpu.memory_space<vmem>>, %arg2: memref<128x128xbf16, #tpu.memory_space<vmem>>, %arg3: memref<1x128xf32, #tpu.memory_space<vmem>>, %arg4: memref<128x128xbf16, #tpu.memory_space<vmem>>, %arg5: memref<1x128xf32, #tpu.memory_space<vmem>>, %arg6: memref<8x128xbf16, #tpu.memory_space<vmem>>, %arg7: memref<1xf32, #tpu.memory_space<smem>>, %arg8: memref<1x1x32xf32, #tpu.memory_space<vmem>>) attributes {dimension_semantics = [#tpu.dimension_semantics<parallel>], iteration_bounds = array<i64: 2>, scalar_prefetch = 0 : i64, scratch_operands = 0 : i64, tpu.core_type = #tpu.core_type<tc>, window_params = [{transform_indices = @transform_0, window_bounds = array<i64: 32, 128>}, {pipeline_mode = #tpu.pipeline_mode<synchronous>, transform_indices = @transform_1, window_bounds = array<i64: 128, 128>}, {pipeline_mode = #tpu.pipeline_mode<synchronous>, transform_indices = @transform_2, window_bounds = array<i64: 1, 128>}, {pipeline_mode = #tpu.pipeline_mode<synchronous>, transform_indices = @transform_3, window_bounds = array<i64: 128, 128>}, {pipeline_mode = #tpu.pipeline_mode<synchronous>, transform_indices = @transform_4, window_bounds = array<i64: 1, 128>}, {pipeline_mode = #tpu.pipeline_mode<synchronous>, transform_indices = @transform_5, window_bounds = array<i64: 8, 128>}, {transform_indices = @transform_6, window_bounds = array<i64: 1>}, {transform_indices = @transform_7, window_bounds = array<i64: 1, 1, 32>}]} {
    %c0 = arith.constant 0 : index
    %c0_0 = arith.constant 0 : index
    %0 = vector.load %arg1[%c0, %c0_0] : memref<32x128xbf16, #tpu.memory_space<vmem>>, vector<32x128xbf16>
    %1 = arith.extf %0 : vector<32x128xbf16> to vector<32x128xf32>
    %2 = arith.truncf %1 : vector<32x128xf32> to vector<32x128xbf16>
    %c0_1 = arith.constant 0 : index
    %c0_2 = arith.constant 0 : index
    %3 = vector.load %arg2[%c0_1, %c0_2] : memref<128x128xbf16, #tpu.memory_space<vmem>>, vector<128x128xbf16>
    %cst = arith.constant dense<0.000000e+00> : vector<32x128xf32>
    %4 = tpu.matmul %2, %3, %cst {dimension_numbers = #tpu.dot_dimension_numbers<[1], [0], [0], [1], [0, 0, 1, 1], [], []>} : vector<32x128xbf16>, vector<128x128xbf16>, vector<32x128xf32> -> vector<32x128xf32>
    %c0_3 = arith.constant 0 : index
    %c0_4 = arith.constant 0 : index
    %5 = vector.load %arg3[%c0_3, %c0_4] : memref<1x128xf32, #tpu.memory_space<vmem>>, vector<1x128xf32>
    %6 = vector.broadcast %5 : vector<1x128xf32> to vector<32x128xf32>
    %7 = arith.addf %4, %6 : vector<32x128xf32>
    %cst_5 = arith.constant 0.000000e+00 : f32
    %8 = vector.broadcast %cst_5 : f32 to vector<32x128xf32>
    %9 = arith.maximumf %7, %8 : vector<32x128xf32>
    %10 = arith.truncf %9 : vector<32x128xf32> to vector<32x128xbf16>
    %c0_6 = arith.constant 0 : index
    %c0_7 = arith.constant 0 : index
    %11 = vector.load %arg4[%c0_6, %c0_7] : memref<128x128xbf16, #tpu.memory_space<vmem>>, vector<128x128xbf16>
    %cst_8 = arith.constant dense<0.000000e+00> : vector<32x128xf32>
    %12 = tpu.matmul %10, %11, %cst_8 {dimension_numbers = #tpu.dot_dimension_numbers<[1], [0], [0], [1], [0, 0, 1, 1], [], []>} : vector<32x128xbf16>, vector<128x128xbf16>, vector<32x128xf32> -> vector<32x128xf32>
    %c0_9 = arith.constant 0 : index
    %c0_10 = arith.constant 0 : index
    %13 = vector.load %arg5[%c0_9, %c0_10] : memref<1x128xf32, #tpu.memory_space<vmem>>, vector<1x128xf32>
    %14 = vector.broadcast %13 : vector<1x128xf32> to vector<32x128xf32>
    %15 = arith.addf %12, %14 : vector<32x128xf32>
    %cst_11 = arith.constant 0.000000e+00 : f32
    %16 = vector.broadcast %cst_11 : f32 to vector<32x128xf32>
    %17 = arith.maximumf %15, %16 : vector<32x128xf32>
    %18 = tpu.transpose %17, [1, 0] : vector<32x128xf32> -> vector<128x32xf32>
    %19 = arith.truncf %18 : vector<128x32xf32> to vector<128x32xbf16>
    %c0_12 = arith.constant 0 : index
    %c0_13 = arith.constant 0 : index
    %20 = vector.load %arg6[%c0_12, %c0_13] : memref<8x128xbf16, #tpu.memory_space<vmem>>, vector<8x128xbf16>
    %cst_14 = arith.constant dense<0.000000e+00> : vector<8x32xf32>
    %21 = tpu.matmul %20, %19, %cst_14 {dimension_numbers = #tpu.dot_dimension_numbers<[1], [0], [0], [1], [0, 0, 1, 1], [], []>} : vector<8x128xbf16>, vector<128x32xbf16>, vector<8x32xf32> -> vector<8x32xf32>
    %22 = vector.extract_strided_slice %21 {offsets = [0, 0], sizes = [1, 32], strides = [1, 1]} : vector<8x32xf32> to vector<1x32xf32>
    %c0_15 = arith.constant 0 : index
    %23 = memref.load %arg7[%c0_15] : memref<1xf32, #tpu.memory_space<smem>>
    %24 = vector.broadcast %23 : f32 to vector<1x32xf32>
    %25 = arith.addf %22, %24 : vector<1x32xf32>
    %c0_16 = arith.constant 0 : index
    %c0_17 = arith.constant 0 : index
    %c0_18 = arith.constant 0 : index
    %26 = vector.load %arg8[%c0_16, %c0_17, %c0_18] : memref<1x1x32xf32, #tpu.memory_space<vmem>>, vector<1x1x32xf32>
    %27 = vector.shape_cast %26 : vector<1x1x32xf32> to vector<1x32xf32>
    %28 = vector.shape_cast %25 : vector<1x32xf32> to vector<1x1x32xf32>
    tpu.vector_store %arg8[%c0_16, %c0_17, %c0_18], %28 {strides = array<i32>} : memref<1x1x32xf32, #tpu.memory_space<vmem>>, vector<1x1x32xf32>,
    return
  }
  func.func @transform_0(%arg0: i32) -> (i32, i32) {
    %c0_i32 = arith.constant 0 : i32
    %c0_i32_0 = arith.constant 0 : i32
    return %arg0, %c0_i32 : i32, i32
  }
  func.func @transform_1(%arg0: i32) -> (i32, i32) {
    %c0_i32 = arith.constant 0 : i32
    %c0_i32_0 = arith.constant 0 : i32
    %c0_i32_1 = arith.constant 0 : i32
    return %c0_i32, %c0_i32_0 : i32, i32
  }
  func.func @transform_2(%arg0: i32) -> (i32, i32) {
    %c0_i32 = arith.constant 0 : i32
    %c0_i32_0 = arith.constant 0 : i32
    %c0_i32_1 = arith.constant 0 : i32
    return %c0_i32, %c0_i32_0 : i32, i32
  }
  func.func @transform_3(%arg0: i32) -> (i32, i32) {
    %c0_i32 = arith.constant 0 : i32
    %c0_i32_0 = arith.constant 0 : i32
    %c0_i32_1 = arith.constant 0 : i32
    return %c0_i32, %c0_i32_0 : i32, i32
  }
  func.func @transform_4(%arg0: i32) -> (i32, i32) {
    %c0_i32 = arith.constant 0 : i32
    %c0_i32_0 = arith.constant 0 : i32
    %c0_i32_1 = arith.constant 0 : i32
    return %c0_i32, %c0_i32_0 : i32, i32
  }
  func.func @transform_5(%arg0: i32) -> (i32, i32) {
    %c0_i32 = arith.constant 0 : i32
    %c0_i32_0 = arith.constant 0 : i32
    %c0_i32_1 = arith.constant 0 : i32
    return %c0_i32, %c0_i32_0 : i32, i32
  }
  func.func @transform_6(%arg0: i32) -> i32 {
    %c0_i32 = arith.constant 0 : i32
    %c0_i32_0 = arith.constant 0 : i32
    return %c0_i32 : i32
  }
  func.func @transform_7(%arg0: i32) -> (i32, i32, i32) {
    %c0_i32 = arith.constant 0 : i32
    %c0_i32_0 = arith.constant 0 : i32
    %c0_i32_1 = arith.constant 0 : i32
    return %arg0, %c0_i32, %c0_i32_0 : i32, i32, i32
  }
}

module attributes {stable_mosaic.version = 11 : i64} {
  func.func @kernel(%arg0: i32, %arg1: memref<32x128xbf16, #tpu.memory_space<vmem>>, %arg2: memref<128x128xbf16, #tpu.memory_space<vmem>>, %arg3: memref<1x128xf32, #tpu.memory_space<vmem>>, %arg4: memref<128x128xbf16, #tpu.memory_space<vmem>>, %arg5: memref<1x128xf32, #tpu.memory_space<vmem>>, %arg6: memref<8x128xbf16, #tpu.memory_space<vmem>>, %arg7: memref<1xf32, #tpu.memory_space<smem>>, %arg8: memref<1x1x32xf32, #tpu.memory_space<vmem>>) attributes {dimension_semantics = [#tpu.dimension_semantics<parallel>], iteration_bounds = array<i64: 2>, scalar_prefetch = 0 : i64, scratch_operands = 0 : i64, tpu.core_type = #tpu.core_type<tc>, window_params = [{transform_indices = @transform_0, window_bounds = array<i64: 32, 128>}, {pipeline_mode = #tpu.pipeline_mode<synchronous>, transform_indices = @transform_1, window_bounds = array<i64: 128, 128>}, {pipeline_mode = #tpu.pipeline_mode<synchronous>, transform_indices = @transform_2, window_bounds = array<i64: 1, 128>}, {pipeline_mode = #tpu.pipeline_mode<synchronous>, transform_indices = @transform_3, window_bounds = array<i64: 128, 128>}, {pipeline_mode = #tpu.pipeline_mode<synchronous>, transform_indices = @transform_4, window_bounds = array<i64: 1, 128>}, {pipeline_mode = #tpu.pipeline_mode<synchronous>, transform_indices = @transform_5, window_bounds = array<i64: 8, 128>}, {transform_indices = @transform_6, window_bounds = array<i64: 1>}, {transform_indices = @transform_7, window_bounds = array<i64: 1, 1, 32>}]} {
    %c0 = arith.constant 0 : index
    %c0_0 = arith.constant 0 : index
    %0 = vector.load %arg1[%c0, %c0_0] : memref<32x128xbf16, #tpu.memory_space<vmem>>, vector<32x128xbf16>
    %1 = arith.extf %0 : vector<32x128xbf16> to vector<32x128xf32>
    %2 = arith.truncf %1 : vector<32x128xf32> to vector<32x128xbf16>
    %c0_1 = arith.constant 0 : index
    %c0_2 = arith.constant 0 : index
    %3 = vector.load %arg2[%c0_1, %c0_2] : memref<128x128xbf16, #tpu.memory_space<vmem>>, vector<128x128xbf16>
    %cst = arith.constant dense<0.000000e+00> : vector<32x128xf32>
    %4 = tpu.matmul %2, %3, %cst {dimension_numbers = #tpu.dot_dimension_numbers<[1], [0], [0], [1], [0, 0, 1, 1], [], []>} : vector<32x128xbf16>, vector<128x128xbf16>, vector<32x128xf32> -> vector<32x128xf32>
    %c0_3 = arith.constant 0 : index
    %c0_4 = arith.constant 0 : index
    %5 = vector.load %arg3[%c0_3, %c0_4] : memref<1x128xf32, #tpu.memory_space<vmem>>, vector<1x128xf32>
    %6 = vector.broadcast %5 : vector<1x128xf32> to vector<32x128xf32>
    %7 = arith.addf %4, %6 : vector<32x128xf32>
    %cst_5 = arith.constant 0.000000e+00 : f32
    %8 = vector.broadcast %cst_5 : f32 to vector<32x128xf32>
    %9 = arith.maximumf %7, %8 : vector<32x128xf32>
    %10 = arith.truncf %9 : vector<32x128xf32> to vector<32x128xbf16>
    %c0_6 = arith.constant 0 : index
    %c0_7 = arith.constant 0 : index
    %11 = vector.load %arg4[%c0_6, %c0_7] : memref<128x128xbf16, #tpu.memory_space<vmem>>, vector<128x128xbf16>
    %cst_8 = arith.constant dense<0.000000e+00> : vector<32x128xf32>
    %12 = tpu.matmul %10, %11, %cst_8 {dimension_numbers = #tpu.dot_dimension_numbers<[1], [0], [0], [1], [0, 0, 1, 1], [], []>} : vector<32x128xbf16>, vector<128x128xbf16>, vector<32x128xf32> -> vector<32x128xf32>
    %c0_9 = arith.constant 0 : index
    %c0_10 = arith.constant 0 : index
    %13 = vector.load %arg5[%c0_9, %c0_10] : memref<1x128xf32, #tpu.memory_space<vmem>>, vector<1x128xf32>
    %14 = vector.broadcast %13 : vector<1x128xf32> to vector<32x128xf32>
    %15 = arith.addf %12, %14 : vector<32x128xf32>
    %cst_11 = arith.constant 0.000000e+00 : f32
    %16 = vector.broadcast %cst_11 : f32 to vector<32x128xf32>
    %17 = arith.maximumf %15, %16 : vector<32x128xf32>
    %18 = tpu.transpose %17, [1, 0] : vector<32x128xf32> -> vector<128x32xf32>
    %19 = arith.truncf %18 : vector<128x32xf32> to vector<128x32xbf16>
    %c0_12 = arith.constant 0 : index
    %c0_13 = arith.constant 0 : index
    %20 = vector.load %arg6[%c0_12, %c0_13] : memref<8x128xbf16, #tpu.memory_space<vmem>>, vector<8x128xbf16>
    %cst_14 = arith.constant dense<0.000000e+00> : vector<8x32xf32>
    %21 = tpu.matmul %20, %19, %cst_14 {dimension_numbers = #tpu.dot_dimension_numbers<[1], [0], [0], [1], [0, 0, 1, 1], [], []>} : vector<8x128xbf16>, vector<128x32xbf16>, vector<8x32xf32> -> vector<8x32xf32>
    %22 = vector.extract_strided_slice %21 {offsets = [0, 0], sizes = [1, 32], strides = [1, 1]} : vector<8x32xf32> to vector<1x32xf32>
    %c0_15 = arith.constant 0 : index
    %23 = memref.load %arg7[%c0_15] : memref<1xf32, #tpu.memory_space<smem>>
    %24 = vector.broadcast %23 : f32 to vector<1x32xf32>
    %25 = arith.addf %22, %24 : vector<1x32xf32>
    %c0_16 = arith.constant 0 : index
    %c0_17 = arith.constant 0 : index
    %c0_18 = arith.constant 0 : index
    %26 = vector.load %arg8[%c0_16, %c0_17, %c0_18] : memref<1x1x32xf32, #tpu.memory_space<vmem>>, vector<1x1x32xf32>
    %27 = vector.shape_cast %26 : vector<1x1x32xf32> to vector<1x32xf32>
    %28 = vector.shape_cast %25 : vector<1x32xf32> to vector<1x1x32xf32>
    tpu.vector_store %arg8[%c0_16, %c0_17, %c0_18], %28 {strides = array<i32>} : memref<1x1x32xf32, #tpu.memory_space<vmem>>, vector<1x1x32xf32>,
    return
  }
  func.func @transform_0(%arg0: i32) -> (i32, i32) {
    %c0_i32 = arith.constant 0 : i32
    %c0_i32_0 = arith.constant 0 : i32
    return %arg0, %c0_i32 : i32, i32
  }
  func.func @transform_1(%arg0: i32) -> (i32, i32) {
    %c0_i32 = arith.constant 0 : i32
    %c0_i32_0 = arith.constant 0 : i32
    %c0_i32_1 = arith.constant 0 : i32
    return %c0_i32, %c0_i32_0 : i32, i32
  }
  func.func @transform_2(%arg0: i32) -> (i32, i32) {
    %c0_i32 = arith.constant 0 : i32
    %c0_i32_0 = arith.constant 0 : i32
    %c0_i32_1 = arith.constant 0 : i32
    return %c0_i32, %c0_i32_0 : i32, i32
  }
  func.func @transform_3(%arg0: i32) -> (i32, i32) {
    %c0_i32 = arith.constant 0 : i32
    %c0_i32_0 = arith.constant 0 : i32
    %c0_i32_1 = arith.constant 0 : i32
    return %c0_i32, %c0_i32_0 : i32, i32
  }
  func.func @transform_4(%arg0: i32) -> (i32, i32) {
    %c0_i32 = arith.constant 0 : i32
    %c0_i32_0 = arith.constant 0 : i32
    %c0_i32_1 = arith.constant 0 : i32
    return %c0_i32, %c0_i32_0 : i32, i32
  }
  func.func @transform_5(%arg0: i32) -> (i32, i32) {
    %c0_i32 = arith.constant 0 : i32
    %c0_i32_0 = arith.constant 0 : i32
    %c0_i32_1 = arith.constant 0 : i32
    return %c0_i32, %c0_i32_0 : i32, i32
  }
  func.func @transform_6(%arg0: i32) -> i32 {
    %c0_i32 = arith.constant 0 : i32
    %c0_i32_0 = arith.constant 0 : i32
    return %c0_i32 : i32
  }
  func.func @transform_7(%arg0: i32) -> (i32, i32, i32) {
    %c0_i32 = arith.constant 0 : i32
    %c0_i32_0 = arith.constant 0 : i32
    %c0_i32_1 = arith.constant 0 : i32
    return %arg0, %c0_i32, %c0_i32_0 : i32, i32, i32
  }
}

</mosaic_0001>

<bundles_post_ra>
// kernel: tpu_custom_call.1
= control target key start
LH: loop header
LB: loop body
LE: loop exit
PB: predicated region body
PF: predicated region fallthrough
CT: control target
= control target key end

     0   :  { %s1456_s0 = inlined_call_operand.hbm [shape: bf16[64,128], index: 0, kind: input, shape index: {}]   ;;  %s1457_s1 = inlined_call_operand.hbm [shape: bf16[128,128], index: 1, kind: input, shape index: {}]   ;;  %s1458_s2 = inlined_call_operand.vmem [shape: f32[1,128], index: 2, kind: input, shape index: {}]   ;;  %s1459_s3 = inlined_call_operand.hbm [shape: bf16[128,128], index: 3, kind: input, shape index: {}]   ;;  %s1460_s4 = inlined_call_operand.vmem [shape: f32[1,128], index: 4, kind: input, shape index: {}]   ;;  %s1461_s5 = inlined_call_operand.vmem [shape: bf16[8,128], index: 5, kind: input, shape index: {}]   ;;  %s1462_s6 = inlined_call_operand.<no memory space> [shape: f32[1], index: 6, kind: input, shape index: {}]   ;;  %s1463_s7 = inlined_call_operand.hbm [shape: f32[2,1,32], index: 7, kind: output, shape index: {}]  }
   0x1   :  { %12 = sst [smem:[#allocation2]] %s1462_s6 }
   0x2   :  { %13 = vsyncpa [#allocation4], 0 }
   0x3   :  { %15 = vsyncpa [#allocation4 + $0x1], 0 }
   0x4   :  { %16 = vsyncpa [#allocation7], 0 }
   0x5   :  { %17 = vsyncpa [#allocation5], 0 }
   0x6   :  { %19 = vsyncpa [#allocation5 + $0x1], 0  ;;  %s1201_s26 = smov 0   ;;  %s1203_s27 = smov 0  }
   0x7   :  { %s1205_s28 = smov 0   ;;  %s1207_s29 = smov 0  }
   0x8 LB: > { %s1222_s6 = sadd.s32 4294967295, %s1148_s29   ;;  %s778_s30 = sadd.s32 4294967294, %s1148_s29   ;;  %s1148_s29 = sphi %s1207_s29, %s1483_s29   ;;  %s1144_s28 = sphi %s1205_s28, %s1482_s28   ;;  %s1140_s27 = sphi %s1203_s27, %s1481_s27   ;;  %s1136_s26 = sphi %s1201_s26, %s1480_s26  }
   0x9   : > { %p45_p0 = scmp.ne.s32.totalorder %s1140_s27, %s1136_s26  ;;  %p1464_p1 = scmp.eq.s32.totalorder %s1222_s6, 0 }
   0xa   : > { %p201_p3 = scmp.eq.s32.totalorder %s778_s30, 1  ;;  %p779_p5 = scmp.ge.s32.totalorder %s1148_s29, 1 }
   0xb   : > { %p1231_p4 = por %p1464_p1, %p45_p0  ;;  %p208_p7 = scmp.lt.s32.totalorder %s1148_s29, 3 }
   0xc   : > { %p1236_p6 = por %p201_p3, %p45_p0  ;;  %s1150_s11 = smov [#allocation6]  }
   0xd   : > { %s1467_s8 = scalar_select %p1231_p4, 1, 0 }
   0xe   : > { %s1468_s9 = scalar_select %p1236_p6, 1, 0 }
   0xf   : > { %p1241_p8 = pnand %p779_p5, %p208_p7  ;;  %s220_s12 = sshll.u32 %s1150_s11, 4  ;;  %s1245_s12 = int_to_ptr.vmem [resolvable:$true] %s220_s12 }
  0x10   : > { %s1151_s14 = smov [#allocation8]   ;;  %s992_s18 = scalar_lea.hbm %s1457_s1, 1024 }
  0x11   : > { %p915_p9 = pneg %p1241_p8  ;;  %s236_s15 = sshll.u32 %s1151_s14, 4  ;;  %s1256_s15 = int_to_ptr.vmem [resolvable:$true] %s236_s15 }
  0x12   : > { %p993_p12 = scmp.ne.s32.totalorder %s1457_s1, %s992_s18  ;;  %p999_p5 = scmp.lt.u32.totalorder %s992_s18, %s1457_s1 }
  0x13   : > { %p1252_p11 = pnand %p915_p9, %p1464_p1 }
  0x15   : > { %p994_p13 = pneg %p1252_p11 }
  0x17   : > { %p995_p0 = pnand %p994_p13, %p993_p12 }
  0x19   : > { %p996_p3 = pneg %p995_p0 }
  0x1b   : > { %p1001_p7 = pnand %p999_p5, %p996_p3 }
  0x1d   : > { %1004 = shalt.err (!%p1001_p7)
}
  0x1e   : > { %s1005_s23 = scalar_lea.vmem %s1245_s12, 1024  ;;  %p1013_p2 = scmp.lt.s32.totalorder %s1245_s12, %s1245_s12 }
  0x1f   : > { %p1006_p9 = scmp.ne.s32.totalorder %s1245_s12, %s1005_s23  ;;  %p1014_p12 = scmp.lt.s32.totalorder %s1005_s23, %s1005_s23 }
  0x21   : > { %p1008_p10 = pnand %p1006_p9, %p994_p13  ;;  %p1015_p0 = por %p1014_p12, %p1013_p2 }
  0x23   : > { %p1009_p1 = pneg %p1008_p10 }
  0x25   : > { %p1016_p6 = pnand %p1015_p0, %p1009_p1 }
  0x27   : > { %1019 = shalt.err (!%p1016_p6)
}
  0x28   : > { %s1152_s24 = smov 64   ;;  %s1153_s25 = smov 4  }
  0x29   : > { %918 = dma.hbm_to_vmem [thread:$0]  (!%p1252_p11), %s1457_s1, 1024, %s1245_s12, [#allocation7], %s1152_s24, %s1152_s24, %s1153_s25  }
  0x2a   : > { %s1020_s17 = scalar_lea.hbm %s1459_s3, 1024 }
  0x2b   : > { %p1021_p1 = scmp.ne.s32.totalorder %s1459_s3, %s1020_s17  ;;  %p1027_p10 = scmp.lt.u32.totalorder %s1020_s17, %s1459_s3 }
  0x2d   : > { %p1023_p2 = pnand %p1021_p1, %p994_p13 }
  0x2f   : > { %p1024_p6 = pneg %p1023_p2 }
  0x31   : > { %p1029_p3 = pnand %p1027_p10, %p1024_p6 }
  0x33   : > { %1032 = shalt.err (!%p1029_p3)
}
  0x34   : > { %s1033_s12 = scalar_lea.vmem %s1256_s15, 1024  ;;  %p1041_p12 = scmp.lt.s32.totalorder %s1256_s15, %s1256_s15 }
  0x35   : > { %p1034_p5 = scmp.ne.s32.totalorder %s1256_s15, %s1033_s12  ;;  %p1042_p0 = scmp.lt.s32.totalorder %s1033_s12, %s1033_s12 }
  0x37   : > { %p1036_p7 = pnand %p1034_p5, %p994_p13  ;;  %p1043_p1 = por %p1042_p0, %p1041_p12 }
  0x39   : > { %p1037_p9 = pneg %p1036_p7 }
  0x3b   : > { %p1044_p2 = pnand %p1043_p1, %p1037_p9 }
  0x3d   : > { %1047 = shalt.err (!%p1044_p2)
}
  0x3e   : > { %921 = dma.hbm_to_vmem [thread:$0]  (!%p1252_p11), %s1459_s3, 1024, %s1256_s15, [#allocation7], %s1152_s24, %s1152_s24, %s1153_s25  }
  0x3f   : > { %s1317_s13 = sadd.s32 1, %s1148_s29   ;;  %s32_s30 = sadd.s32 1, %s1144_s28 }
  0x40   : > { %s29_s11 = ssub.s32 %s1148_s29, %s1317_s13  ;;  %p39_p13 = scmp.ne.s32.totalorder %s1144_s28, %s1140_s27 }
  0x41   : > { %p30_p6 = scmp.eq.s32.totalorder %s29_s11, 0  ;;  %p40_p10 = scmp.eq.s32.totalorder %s1148_s29, 0 }
  0x42   : > { %p1471_p3 = scmp.eq.s32.totalorder %s1222_s6, 1  ;;  %p932_p7 = scmp.lt.s32.totalorder %s1148_s29, 2 }
  0x43   : > { %s1333_s16 = scalar_select %p30_p6, %s1144_s28, %s32_s30  }
  0x44   : > { %p1327_p5 = por %p1471_p3, %p39_p13  ;;  %p41_p9 = por %p40_p10, %p39_p13 }
  0x45   : > { %s259_s17 = sand.u32 1, %s1144_s28   ;;  %s813_s15 = sshll.u32 %s1148_s29, 8 }
  0x46   : > { %s1472_s14 = scalar_select %p1327_p5, 1, 0 }
  0x47   : > { %s783_s18 = sshll.u32 %s259_s17, 4  ;;  %s1340_s21 = scalar_lea.hbm %s1456_s0, %s813_s15 }
  0x48   : > { %s263_s12 = scalar_lea.vmem [#allocation3], %s783_s18  ;;  %p1344_p11 = pnand %p932_p7, %p41_p9 }
  0x49   : > { %s270_s22 = sshll.u32 %s263_s12, 4  ;;  %s1348_s30 = scalar_lea.sflag [#allocation4], %s259_s17  ;;  %s1342_s22 = int_to_ptr.vmem [resolvable:$true] %s270_s22 }
  0x4a   : > { %s1048_s11 = scalar_lea.hbm %s1340_s21, 256  ;;  %p1050_p0 = pneg %p1344_p11 }
  0x4b   : > { %p1049_p12 = scmp.ne.s32.totalorder %s1340_s21, %s1048_s11  ;;  %s1053_s19 = scalar_lea.hbm %s1456_s0, 512 }
  0x4c   : > { %p1054_p13 = scmp.lt.u32.totalorder %s1340_s21, %s1456_s0  ;;  %p1055_p6 = scmp.lt.u32.totalorder %s1053_s19, %s1048_s11 }
  0x4d   : > { %p1051_p1 = pnand %p1050_p0, %p1049_p12  ;;  %p1057_p3 = scmp.lt.u32.totalorder %s1048_s11, %s1340_s21 }
  0x4e   : > { %p1056_p10 = por %p1055_p6, %p1054_p13 }
  0x4f   : > { %p1052_p2 = pneg %p1051_p1 }
  0x50   : > { %p1058_p7 = por %p1057_p3, %p1056_p10 }
  0x52   : > { %p1059_p9 = pnand %p1058_p7, %p1052_p2 }
  0x54   : > { %1062 = shalt.err (!%p1059_p9)
}
  0x55   : > { %s1063_s17 = scalar_lea.vmem %s1342_s22, 256  ;;  %s1154_s18 = smov [#allocation3]  }
  0x56   : > { %p1064_p12 = scmp.ne.s32.totalorder %s1342_s22, %s1063_s17  ;;  %s1068_s15 = sshll.u32 %s1154_s18, 4  ;;  %s1069_s15 = int_to_ptr.vmem [resolvable:$false] %s1068_s15 }
  0x57   : > { %s1070_s20 = scalar_lea.vmem %s1069_s15, 512  ;;  %p1071_p4 = scmp.lt.s32.totalorder %s1342_s22, %s1069_s15 }
  0x58   : > { %p1066_p1 = pnand %p1064_p12, %p1050_p0  ;;  %p1072_p13 = scmp.lt.s32.totalorder %s1070_s20, %s1063_s17 }
  0x5a   : > { %p1067_p5 = pneg %p1066_p1  ;;  %p1073_p6 = por %p1072_p13, %p1071_p4 }
  0x5c   : > { %p1074_p10 = pnand %p1073_p6, %p1067_p5 }
  0x5e   : > { %1077 = shalt.err (!%p1074_p10)
}
  0x5f   : > { %925 = dma.hbm_to_vmem [thread:$0]  (!%p1344_p11), %s1340_s21, 256, %s1342_s22, %s1348_s30, %s1152_s24, %s1152_s24, %s1153_s25  }
  0x60   : > { %282 = sbr.rel (%p1241_p8) target bundleno = 1001 (0x3e9), region = 48  ;;  %s1382_s11 = sand.u32 (!%p1241_p8), 1, %s1140_s27  }
  0x61   : > { %s787_s19 = sshll.u32 (!%p1241_p8), %s1382_s11, 4  ;;  %s285_s12 = scalar_lea.sflag (!%p1241_p8), [#allocation4], %s1382_s11 }
  0x62   : > { %s1386_s17 = scalar_lea.vmem (!%p1241_p8), [#allocation3], %s787_s19  ;;  %p1474_p4 = scmp.ne.s32.totalorder (!%p1241_p8), %s1467_s8, 0 }
  0x67   : > { %1123 = dma.done.wait (%p1474_p4), %s285_s12, 256  }
  0x68   : > { %1125 = vsyncadd (%p1474_p4), %s285_s12, 4294967040  ;;  %p1475_p5 = scmp.eq.s32.totalorder %s1222_s6, 0 }
  0x6a   : > { %1127 = dma.done.wait (%p1475_p5), [#allocation7], 2048   ;;  %p1476_p8 = pmov %p1475_p5 }
  0x6b   : > { %v974_v0 = vld [vmem:[#allocation6] sm:$0xff]   ;;  %v975_v1 = vld [vmem:[#allocation6 + $0x8] sm:$0xff]   ;;  %v976_v2 = vld [vmem:[#allocation6 + $0x10] sm:$0xff]   ;;  %v1155_v45 = vmov 0.0   ;;  %vm1156_vm0 = vmmov 0   ;;  %s675_s23 = sld [smem:[#allocation2]] }
  0x6c   : > { %1129 = vsyncadd (%p1476_p8), [#allocation7], 4294965248  ;;  %843 = vmatprep.subr.bf16.mxu0 %v974_v0  ;;  %v977_v3 = vld [vmem:[#allocation6 + $0x18] sm:$0xff]   ;;  %v982_v4 = vld [vmem:[%s1386_s17] sm:$0xff]   ;;  %s810_s30 = sshll.u32 %s1222_s6, 4  ;;  %s325_s18 = scalar_lea.vmem [#allocation9], %s1382_s11 }
  0x6d   : > { %844 = vmatpush3.bf16.msra.mxu0 %v974_v0  ;;  %859 = vmatprep.mubr.bf16.mxu0 %v982_v4  ;;  %v984_v5 = vld [vmem:[#allocation8] sm:$0xff]   ;;  %v985_v6 = vld [vmem:[#allocation8 + $0x8] sm:$0xff]   ;;  %v986_v8 = vld [vmem:[#allocation8 + $0x10] sm:$0xff]   ;;  %s693_s15 = sshll.u32 %s325_s18, 4  ;;  %vm678_vm1 = vcmask 253952   ;;  %s1412_s12 = scalar_lea.hbm %s1463_s7, %s810_s30  ;;  %s1414_s15 = int_to_ptr.vmem [resolvable:$true] %s693_s15 }
  0x6e   : > { %845 = vmatprep.subr.bf16.mxu0 %v975_v1  ;;  %v978_v7 = vld [vmem:[#allocation6 + $0x20] sm:$0xff]   ;;  %863 = vmatprep.subr.bf16.mxu1 %v984_v5  ;;  %v979_v9 = vld [vmem:[#allocation6 + $0x28] sm:$0xff]   ;;  %v987_v10 = vld [vmem:[#allocation8 + $0x18] sm:$0xff]   ;;  %s681_s6 = scalar_lea.sflag [#allocation5], %s1382_s11  ;;  %p1477_p0 = scmp.ne.s32.totalorder %s1472_s14, 0 }
  0x6f   : > { %864 = vmatpush3.bf16.msra.mxu1 %v984_v5  ;;  %v980_v11 = vld [vmem:[#allocation6 + $0x30] sm:$0xff]   ;;  %v988_v12 = vld [vmem:[#allocation8 + $0x20] sm:$0xff]   ;;  %v981_v13 = vld [vmem:[#allocation6 + $0x38] sm:$0xff]   ;;  %s1157_s8 = smov [#allocation9]  }
  0x70   : > { %865 = vmatprep.subr.bf16.mxu1 %v985_v6  ;;  %v989_v14 = vld [vmem:[#allocation8 + $0x28] sm:$0xff]   ;;  %v990_v16 = vld [vmem:[#allocation8 + $0x30] sm:$0xff]   ;;  %v991_v17 = vld [vmem:[#allocation8 + $0x38] sm:$0xff]   ;;  %s1082_s10 = sshll.u32 %s1157_s8, 4  ;;  %s1083_s10 = int_to_ptr.vmem [resolvable:$false] %s1082_s10 }
  0x71   : > { %846 = vmatpush3.bf16.msra.mxu0 %v975_v1  ;;  %v983_v15 = vld [vmem:[%s1386_s17 + $0x8] sm:$0xff]   ;;  %v790_v18 = vld [vmem:[%s1458_s2] ss:$0 sm:$0xff]  ;;  %s1078_s17 = scalar_lea.vmem %s1414_s15, 16  ;;  %s1084_s24 = scalar_lea.vmem %s1083_s10, 32 }
  0x72   : > { %847 = vmatprep.subr.bf16.mxu0 %v976_v2  ;;  %v801_v33 = vld [vmem:[%s1460_s4] ss:$0 sm:$0xff]  ;;  %p1079_p11 = scmp.ne.s32.totalorder %s1414_s15, %s1078_s17  ;;  %p1085_p7 = scmp.lt.s32.totalorder %s1414_s15, %s1083_s10 }
  0x73   : > { %866 = vmatpush3.bf16.msra.mxu1 %v985_v6  ;;  %p1086_p9 = scmp.lt.s32.totalorder %s1084_s24, %s1078_s17 }
  0x74   : > { %867 = vmatprep.subr.bf16.mxu1 %v986_v8  ;;  %p1080_p2 = pnand %p1079_p11, %p1477_p0 }
  0x75   : > { %848 = vmatpush3.bf16.msra.mxu0 %v976_v2  ;;  %p1087_p12 = por %p1086_p9, %p1085_p7 }
  0x76   : > { %849 = vmatprep.subr.bf16.mxu0 %v977_v3  ;;  %p1081_p3 = pneg %p1080_p2 }
  0x77   : > { %868 = vmatpush3.bf16.msra.mxu1 %v986_v8  ;;  %v676_v8 = vstv %s675_s23 }
  0x78   : > { %869 = vmatprep.subr.bf16.mxu1 %v987_v10  ;;  %p1088_p1 = pnand %p1087_p12, %p1081_p3 }
  0x79   : > { %850 = vmatpush3.bf16.msra.mxu0 %v977_v3 }
  0x7a   : > { %851 = vmatprep.subr.bf16.mxu0 %v978_v7 }
  0x7b   : > { %870 = vmatpush3.bf16.msra.mxu1 %v987_v10 }
  0x7c   : > { %871 = vmatprep.subr.bf16.mxu1 %v988_v12 }
  0x7d   : > { %852 = vmatpush3.bf16.msra.mxu0 %v978_v7  ;;  %v634_v7 = vld [vmem:[%s1461_s5] sm:$0xf] }
  0x7e   : > { %853 = vmatprep.subr.bf16.mxu0 %v979_v9 }
  0x7f   : > { %872 = vmatpush3.bf16.msra.mxu1 %v988_v12 }
  0x80   : > { %873 = vmatprep.subr.bf16.mxu1 %v989_v14 }
  0x81   : > { %854 = vmatpush3.bf16.msra.mxu0 %v979_v9 }
  0x82   : > { %855 = vmatprep.subr.bf16.mxu0 %v980_v11 }
  0x83   : > { %874 = vmatpush3.bf16.msra.mxu1 %v989_v14 }
  0x84   : > { %875 = vmatprep.subr.bf16.mxu1 %v990_v16 }
  0x85   : > { %856 = vmatpush3.bf16.msra.mxu0 %v980_v11 }
  0x86   : > { %857 = vmatprep.subr.bf16.mxu0 %v981_v13 }
  0x87   : > { %876 = vmatpush3.bf16.msra.mxu1 %v990_v16 }
  0x88   : > { %877 = vmatprep.subr.bf16.mxu1 %v991_v17 }
  0x89   : > { %858 = vmatpush3.bf16.msra.mxu0 %v981_v13 }
  0x8a   : > { %883 = vmatprep.subr.bf16.mxu0 %v1155_v45 }
  0x8b   : > { %878 = vmatpush3.bf16.msra.mxu1 %v991_v17 }
  0x8c   : > { %860 = vmatmul.mubr.bf16.vlgmr.msra.gmra.mrb[0].mxu0 %v983_v15 }
  0x8d   : > { %899 = vmatprep.mubr.msk.bf16.mxu0 %vm1156_vm0, %v1155_v45 }
 0x15f   : > { %v861_v19 = vpop.f32.mrb[0].mxu0 }
 0x160   : > { %v458_v20 = vadd.f32 %v861_v19, %v790_v18  ;;  %v449_v21 = vpop.f32.mrb[1].mxu0 }
 0x161   : > { %v450_v22 = vadd.f32 %v790_v18, %v449_v21  ;;  %v862_v23 = vpop.f32.mrb[2].mxu0 }
 0x162   : > { %v461_v24 = vadd.f32 %v862_v23, %v790_v18  ;;  %v452_v25 = vpop.f32.mrb[3].mxu0  ;;  %v466_v27 = vmax.f32 %v458_v20, 0.0 }
 0x163   : > { %v453_v26 = vadd.f32 %v790_v18, %v452_v25  ;;  %v464_v29 = vmax.f32 %v450_v22, 0.0 }
 0x164   : > { %v467_v28 = vmax.f32 %v461_v24, 0.0 }
 0x165   : > { %v465_v30 = vmax.f32 %v453_v26, 0.0 }
 0x166   : > { %v469_v31 = vpack.c.bf16 %v467_v28, %v466_v27 }
 0x167   : > { %v468_v32 = vpack.c.bf16 %v465_v30, %v464_v29 }
 0x169   : > { %879 = vmatprep.mubr.bf16.mxu1 %v468_v32 }
 0x16a   : > { %880 = vmatmul.mubr.bf16.vlgmr.msra.gmra.mrb[0].mxu1 %v469_v31 }
 0x23d   : > { %v881_v34 = vpop.f32.mrb[0].mxu1 }
 0x23e   : > { %v575_v35 = vpop.f32.mrb[1].mxu1  ;;  %v584_v41 = vadd.f32 %v881_v34, %v801_v33 }
 0x23f   : > { %v882_v36 = vpop.f32.mrb[2].mxu1  ;;  %v576_v37 = vadd.f32 %v801_v33, %v575_v35 }
 0x240   : > { %v578_v38 = vpop.f32.mrb[3].mxu1  ;;  %v592_v43 = vmax.f32 %v584_v41, 0.0  ;;  %v587_v44 = vadd.f32 %v882_v36, %v801_v33 }
 0x241   : > { %v579_v39 = vadd.f32 %v801_v33, %v578_v38  ;;  %v590_v40 = vmax.f32 %v576_v37, 0.0 }
 0x242   : > { %v593_v46 = vmax.f32 %v587_v44, 0.0 }
 0x243   : > { %594 = vxpose.xlu0.b32.start [1/4] (short) %v590_v40, 128  ;;  %v591_v42 = vmax.f32 %v579_v39, 0.0 }
 0x247   : > { %595 = vxpose.xlu0.b32.cont [2/4] (short) %v591_v42, 128 }
 0x24b   : > { %596 = vxpose.xlu0.b32.cont [3/4] (short) %v592_v43, 128 }
 0x24f   : > { %597 = vxpose.xlu0.b32.end [4/4] (short) %v593_v46, 128 }
 0x2c3   : > { %v610_v47 = vpop.trf.xlu0 }
 0x2c7   : > { %v611_v48 = vpop.trf.xlu0 }
 0x2c8   : > { %v626_v49 = vpack.c.bf16 %v611_v48, %v610_v47 }
 0x2ca   : > { %884 = vmatpush3.bf16.msra.mxu0 %v626_v49 }
 0x2cb   : > { %v612_v50 = vpop.trf.xlu0  ;;  %885 = vmatprep.subr.bf16.mxu0 %v1155_v45 }
 0x2cf   : > { %v613_v51 = vpop.trf.xlu0 }
 0x2d0   : > { %v627_v52 = vpack.c.bf16 %v613_v51, %v612_v50 }
 0x2d2   : > { %886 = vmatpush3.bf16.msra.mxu0 %v627_v52 }
 0x2d3   : > { %v614_v53 = vpop.trf.xlu0  ;;  %887 = vmatprep.subr.bf16.mxu0 %v1155_v45 }
 0x2d7   : > { %v615_v54 = vpop.trf.xlu0 }
 0x2d8   : > { %v628_v55 = vpack.c.bf16 %v615_v54, %v614_v53 }
 0x2da   : > { %888 = vmatpush3.bf16.msra.mxu0 %v628_v55 }
 0x2db   : > { %v616_v56 = vpop.trf.xlu0  ;;  %889 = vmatprep.subr.bf16.mxu0 %v1155_v45 }
 0x2df   : > { %v617_v57 = vpop.trf.xlu0 }
 0x2e0   : > { %v629_v58 = vpack.c.bf16 %v617_v57, %v616_v56 }
 0x2e2   : > { %890 = vmatpush3.bf16.msra.mxu0 %v629_v58 }
 0x2e3   : > { %v618_v59 = vpop.trf.xlu0  ;;  %891 = vmatprep.subr.bf16.mxu0 %v1155_v45 }
 0x2e7   : > { %v619_v60 = vpop.trf.xlu0 }
 0x2e8   : > { %v630_v61 = vpack.c.bf16 %v619_v60, %v618_v59 }
 0x2ea   : > { %892 = vmatpush3.bf16.msra.mxu0 %v630_v61 }
 0x2eb   : > { %v620_v62 = vpop.trf.xlu0  ;;  %893 = vmatprep.subr.bf16.mxu0 %v1155_v45 }
 0x2ef   : > { %v621_v63 = vpop.trf.xlu0 }
 0x2f0   : > { %v631_v0 = vpack.c.bf16 %v621_v63, %v620_v62 }
 0x2f2   : > { %894 = vmatpush3.bf16.msra.mxu0 %v631_v0 }
 0x2f3   : > { %v622_v1 = vpop.trf.xlu0  ;;  %895 = vmatprep.subr.bf16.mxu0 %v1155_v45 }
 0x2f7   : > { %v623_v2 = vpop.trf.xlu0 }
 0x2f8   : > { %v632_v3 = vpack.c.bf16 %v623_v2, %v622_v1 }
 0x2fa   : > { %896 = vmatpush3.bf16.msra.mxu0 %v632_v3 }
 0x2fb   : > { %v624_v4 = vpop.trf.xlu0  ;;  %897 = vmatprep.subr.bf16.mxu0 %v1155_v45 }
 0x2ff   : > { %v625_v5 = vpop.trf.xlu0 }
 0x300   : > { %v633_v6 = vpack.c.bf16 %v625_v5, %v624_v4 }
 0x302   : > { %898 = vmatpush3.bf16.msra.mxu0 %v633_v6 }
 0x305   : > { %900 = vmatmul.mubr.bf16.vlgmr.msra.gmra.mrb[4].mxu0 %v634_v7 }
 0x3d8   : > { %v669_v9 = vpop.f32.mrb[4].mxu0 }
 0x3d9   : > { %v677_v10 = vadd.f32 %v676_v8, %v669_v9  ;;  %v901_v11 = vpop.f32.mrb[5].mxu0 }
 0x3da   : > { %v672_v12 = vpop.f32.mrb[6].mxu0 }
 0x3db   : > { %v902_v13 = vpop.f32.mrb[7].mxu0  ;;  %679 = vst.msk [vmem:[%s325_s18] sm:$0x1] %vm678_vm1, %v677_v10 }
 0x3dc   : > { %1091 = shalt.err (!%p1088_p1)
}
 0x3dd   : > { %s1092_s11 = scalar_lea.hbm %s1412_s12, 16  ;;  %s1096_s22 = scalar_lea.hbm %s1463_s7, 32 }
 0x3de   : > { %p1093_p13 = scmp.ne.s32.totalorder %s1412_s12, %s1092_s11  ;;  %p1097_p4 = scmp.lt.u32.totalorder %s1412_s12, %s1463_s7 }
 0x3df   : > { %p1098_p5 = scmp.lt.u32.totalorder %s1096_s22, %s1092_s11  ;;  %p1100_p11 = scmp.lt.u32.totalorder %s1092_s11, %s1412_s12 }
 0x3e0   : > { %p1094_p6 = pnand %p1093_p13, %p1477_p0 }
 0x3e1   : > { %p1099_p8 = por %p1098_p5, %p1097_p4 }
 0x3e2   : > { %p1095_p10 = pneg %p1094_p6 }
 0x3e3   : > { %p1101_p2 = por %p1100_p11, %p1099_p8 }
 0x3e5   : > { %p1102_p3 = pnand %p1101_p2, %p1095_p10 }
 0x3e7   : > { %1105 = shalt.err (!%p1102_p3)
}
 0x3e8   : > { %913 = dma.vmem_to_hbm [thread:$0]  (%p1477_p0), %s1414_s15, 16, %s1412_s12, %s681_s6  }
 0x3e9 PF: > { %s705_s18 = sand.u32 1, %s1136_s26   ;;  %p1478_p7 = scmp.ne.s32.totalorder %s1468_s9, 0 }
 0x3ea   : > { %p1479_p9 = scmp.ge.s32.totalorder %s1148_s29, 2  ;;  %s706_s20 = scalar_lea.sflag [#allocation5], %s705_s18 }
 0x3ec   : > { %p927_p12 = pnand %p1479_p9, %p1478_p7 }
 0x3ee   : > { %1131 = dma.done.wait (!%p927_p12), %s706_s20, 16  }
 0x3ef   : > { %1133 = vsyncadd (!%p927_p12), %s706_s20, 4294967280  ;;  %p22_p1 = scmp.ge.s32.totalorder %s1317_s13, 4   ;;  %s1480_s26 = smov %s1140_s27 }
 0x3f0   : > { %s1481_s27 = smov %s1144_s28  ;;  %s1482_s28 = smov %s1333_s16 }
 0x3f1   : > { %s1483_s29 = smov %s1317_s13  ;;  %24 = sbr.rel (!%p22_p1) target bundleno = 8 (0x8), region = 101 }
 0x3f8   :  { %710 = vsyncpa [#allocation4], 1 }
 0x3f9   :  { %712 = vsyncpa [#allocation4 + $0x1], 1 }
 0x3fa   :  { %713 = vsyncpa [#allocation7], 1 }
 0x3fb   :  { %714 = vsyncpa [#allocation5], 1 }
 0x3fc   :  { %716 = vsyncpa [#allocation5 + $0x1], 1 }

// kernel: tpu_custom_call.1
= control target key start
LH: loop header
LB: loop body
LE: loop exit
PB: predicated region body
PF: predicated region fallthrough
CT: control target
= control target key end

     0   :  { %s1456_s0 = inlined_call_operand.hbm [shape: bf16[64,128], index: 0, kind: input, shape index: {}]   ;;  %s1457_s1 = inlined_call_operand.hbm [shape: bf16[128,128], index: 1, kind: input, shape index: {}]   ;;  %s1458_s2 = inlined_call_operand.vmem [shape: f32[1,128], index: 2, kind: input, shape index: {}]   ;;  %s1459_s3 = inlined_call_operand.hbm [shape: bf16[128,128], index: 3, kind: input, shape index: {}]   ;;  %s1460_s4 = inlined_call_operand.vmem [shape: f32[1,128], index: 4, kind: input, shape index: {}]   ;;  %s1461_s5 = inlined_call_operand.vmem [shape: bf16[8,128], index: 5, kind: input, shape index: {}]   ;;  %s1462_s6 = inlined_call_operand.<no memory space> [shape: f32[1], index: 6, kind: input, shape index: {}]   ;;  %s1463_s7 = inlined_call_operand.hbm [shape: f32[2,1,32], index: 7, kind: output, shape index: {}]  }
   0x1   :  { %12 = sst [smem:[#allocation2]] %s1462_s6 }
   0x2   :  { %13 = vsyncpa [#allocation4], 0 }
   0x3   :  { %15 = vsyncpa [#allocation4 + $0x1], 0 }
   0x4   :  { %16 = vsyncpa [#allocation7], 0 }
   0x5   :  { %17 = vsyncpa [#allocation5], 0 }
   0x6   :  { %19 = vsyncpa [#allocation5 + $0x1], 0  ;;  %s1201_s26 = smov 0   ;;  %s1203_s27 = smov 0  }
   0x7   :  { %s1205_s28 = smov 0   ;;  %s1207_s29 = smov 0  }
   0x8 LB: > { %s1222_s6 = sadd.s32 4294967295, %s1148_s29   ;;  %s778_s30 = sadd.s32 4294967294, %s1148_s29   ;;  %s1148_s29 = sphi %s1207_s29, %s1483_s29   ;;  %s1144_s28 = sphi %s1205_s28, %s1482_s28   ;;  %s1140_s27 = sphi %s1203_s27, %s1481_s27   ;;  %s1136_s26 = sphi %s1201_s26, %s1480_s26  }
   0x9   : > { %p45_p0 = scmp.ne.s32.totalorder %s1140_s27, %s1136_s26  ;;  %p1464_p1 = scmp.eq.s32.totalorder %s1222_s6, 0 }
   0xa   : > { %p201_p3 = scmp.eq.s32.totalorder %s778_s30, 1  ;;  %p779_p5 = scmp.ge.s32.totalorder %s1148_s29, 1 }
   0xb   : > { %p1231_p4 = por %p1464_p1, %p45_p0  ;;  %p208_p7 = scmp.lt.s32.totalorder %s1148_s29, 3 }
   0xc   : > { %p1236_p6 = por %p201_p3, %p45_p0  ;;  %s1150_s11 = smov [#allocation6]  }
   0xd   : > { %s1467_s8 = scalar_select %p1231_p4, 1, 0 }
   0xe   : > { %s1468_s9 = scalar_select %p1236_p6, 1, 0 }
   0xf   : > { %p1241_p8 = pnand %p779_p5, %p208_p7  ;;  %s220_s12 = sshll.u32 %s1150_s11, 4  ;;  %s1245_s12 = int_to_ptr.vmem [resolvable:$true] %s220_s12 }
  0x10   : > { %s1151_s14 = smov [#allocation8]   ;;  %s992_s18 = scalar_lea.hbm %s1457_s1, 1024 }
  0x11   : > { %p915_p9 = pneg %p1241_p8  ;;  %s236_s15 = sshll.u32 %s1151_s14, 4  ;;  %s1256_s15 = int_to_ptr.vmem [resolvable:$true] %s236_s15 }
  0x12   : > { %p993_p12 = scmp.ne.s32.totalorder %s1457_s1, %s992_s18  ;;  %p999_p5 = scmp.lt.u32.totalorder %s992_s18, %s1457_s1 }
  0x13   : > { %p1252_p11 = pnand %p915_p9, %p1464_p1 }
  0x15   : > { %p994_p13 = pneg %p1252_p11 }
  0x17   : > { %p995_p0 = pnand %p994_p13, %p993_p12 }
  0x19   : > { %p996_p3 = pneg %p995_p0 }
  0x1b   : > { %p1001_p7 = pnand %p999_p5, %p996_p3 }
  0x1d   : > { %1004 = shalt.err (!%p1001_p7)
}
  0x1e   : > { %s1005_s23 = scalar_lea.vmem %s1245_s12, 1024  ;;  %p1013_p2 = scmp.lt.s32.totalorder %s1245_s12, %s1245_s12 }
  0x1f   : > { %p1006_p9 = scmp.ne.s32.totalorder %s1245_s12, %s1005_s23  ;;  %p1014_p12 = scmp.lt.s32.totalorder %s1005_s23, %s1005_s23 }
  0x21   : > { %p1008_p10 = pnand %p1006_p9, %p994_p13  ;;  %p1015_p0 = por %p1014_p12, %p1013_p2 }
  0x23   : > { %p1009_p1 = pneg %p1008_p10 }
  0x25   : > { %p1016_p6 = pnand %p1015_p0, %p1009_p1 }
  0x27   : > { %1019 = shalt.err (!%p1016_p6)
}
  0x28   : > { %s1152_s24 = smov 64   ;;  %s1153_s25 = smov 4  }
  0x29   : > { %918 = dma.hbm_to_vmem [thread:$0]  (!%p1252_p11), %s1457_s1, 1024, %s1245_s12, [#allocation7], %s1152_s24, %s1152_s24, %s1153_s25  }
  0x2a   : > { %s1020_s17 = scalar_lea.hbm %s1459_s3, 1024 }
  0x2b   : > { %p1021_p1 = scmp.ne.s32.totalorder %s1459_s3, %s1020_s17  ;;  %p1027_p10 = scmp.lt.u32.totalorder %s1020_s17, %s1459_s3 }
  0x2d   : > { %p1023_p2 = pnand %p1021_p1, %p994_p13 }
  0x2f   : > { %p1024_p6 = pneg %p1023_p2 }
  0x31   : > { %p1029_p3 = pnand %p1027_p10, %p1024_p6 }
  0x33   : > { %1032 = shalt.err (!%p1029_p3)
}
  0x34   : > { %s1033_s12 = scalar_lea.vmem %s1256_s15, 1024  ;;  %p1041_p12 = scmp.lt.s32.totalorder %s1256_s15, %s1256_s15 }
  0x35   : > { %p1034_p5 = scmp.ne.s32.totalorder %s1256_s15, %s1033_s12  ;;  %p1042_p0 = scmp.lt.s32.totalorder %s1033_s12, %s1033_s12 }
  0x37   : > { %p1036_p7 = pnand %p1034_p5, %p994_p13  ;;  %p1043_p1 = por %p1042_p0, %p1041_p12 }
  0x39   : > { %p1037_p9 = pneg %p1036_p7 }
  0x3b   : > { %p1044_p2 = pnand %p1043_p1, %p1037_p9 }
  0x3d   : > { %1047 = shalt.err (!%p1044_p2)
}
  0x3e   : > { %921 = dma.hbm_to_vmem [thread:$0]  (!%p1252_p11), %s1459_s3, 1024, %s1256_s15, [#allocation7], %s1152_s24, %s1152_s24, %s1153_s25  }
  0x3f   : > { %s1317_s13 = sadd.s32 1, %s1148_s29   ;;  %s32_s30 = sadd.s32 1, %s1144_s28 }
  0x40   : > { %s29_s11 = ssub.s32 %s1148_s29, %s1317_s13  ;;  %p39_p13 = scmp.ne.s32.totalorder %s1144_s28, %s1140_s27 }
  0x41   : > { %p30_p6 = scmp.eq.s32.totalorder %s29_s11, 0  ;;  %p40_p10 = scmp.eq.s32.totalorder %s1148_s29, 0 }
  0x42   : > { %p1471_p3 = scmp.eq.s32.totalorder %s1222_s6, 1  ;;  %p932_p7 = scmp.lt.s32.totalorder %s1148_s29, 2 }
  0x43   : > { %s1333_s16 = scalar_select %p30_p6, %s1144_s28, %s32_s30  }
  0x44   : > { %p1327_p5 = por %p1471_p3, %p39_p13  ;;  %p41_p9 = por %p40_p10, %p39_p13 }
  0x45   : > { %s259_s17 = sand.u32 1, %s1144_s28   ;;  %s813_s15 = sshll.u32 %s1148_s29, 8 }
  0x46   : > { %s1472_s14 = scalar_select %p1327_p5, 1, 0 }
  0x47   : > { %s783_s18 = sshll.u32 %s259_s17, 4  ;;  %s1340_s21 = scalar_lea.hbm %s1456_s0, %s813_s15 }
  0x48   : > { %s263_s12 = scalar_lea.vmem [#allocation3], %s783_s18  ;;  %p1344_p11 = pnand %p932_p7, %p41_p9 }
  0x49   : > { %s270_s22 = sshll.u32 %s263_s12, 4  ;;  %s1348_s30 = scalar_lea.sflag [#allocation4], %s259_s17  ;;  %s1342_s22 = int_to_ptr.vmem [resolvable:$true] %s270_s22 }
  0x4a   : > { %s1048_s11 = scalar_lea.hbm %s1340_s21, 256  ;;  %p1050_p0 = pneg %p1344_p11 }
  0x4b   : > { %p1049_p12 = scmp.ne.s32.totalorder %s1340_s21, %s1048_s11  ;;  %s1053_s19 = scalar_lea.hbm %s1456_s0, 512 }
  0x4c   : > { %p1054_p13 = scmp.lt.u32.totalorder %s1340_s21, %s1456_s0  ;;  %p1055_p6 = scmp.lt.u32.totalorder %s1053_s19, %s1048_s11 }
  0x4d   : > { %p1051_p1 = pnand %p1050_p0, %p1049_p12  ;;  %p1057_p3 = scmp.lt.u32.totalorder %s1048_s11, %s1340_s21 }
  0x4e   : > { %p1056_p10 = por %p1055_p6, %p1054_p13 }
  0x4f   : > { %p1052_p2 = pneg %p1051_p1 }
  0x50   : > { %p1058_p7 = por %p1057_p3, %p1056_p10 }
  0x52   : > { %p1059_p9 = pnand %p1058_p7, %p1052_p2 }
  0x54   : > { %1062 = shalt.err (!%p1059_p9)
}
  0x55   : > { %s1063_s17 = scalar_lea.vmem %s1342_s22, 256  ;;  %s1154_s18 = smov [#allocation3]  }
  0x56   : > { %p1064_p12 = scmp.ne.s32.totalorder %s1342_s22, %s1063_s17  ;;  %s1068_s15 = sshll.u32 %s1154_s18, 4  ;;  %s1069_s15 = int_to_ptr.vmem [resolvable:$false] %s1068_s15 }
  0x57   : > { %s1070_s20 = scalar_lea.vmem %s1069_s15, 512  ;;  %p1071_p4 = scmp.lt.s32.totalorder %s1342_s22, %s1069_s15 }
  0x58   : > { %p1066_p1 = pnand %p1064_p12, %p1050_p0  ;;  %p1072_p13 = scmp.lt.s32.totalorder %s1070_s20, %s1063_s17 }
  0x5a   : > { %p1067_p5 = pneg %p1066_p1  ;;  %p1073_p6 = por %p1072_p13, %p1071_p4 }
  0x5c   : > { %p1074_p10 = pnand %p1073_p6, %p1067_p5 }
  0x5e   : > { %1077 = shalt.err (!%p1074_p10)
}
  0x5f   : > { %925 = dma.hbm_to_vmem [thread:$0]  (!%p1344_p11), %s1340_s21, 256, %s1342_s22, %s1348_s30, %s1152_s24, %s1152_s24, %s1153_s25  }
  0x60   : > { %282 = sbr.rel (%p1241_p8) target bundleno = 1001 (0x3e9), region = 48  ;;  %s1382_s11 = sand.u32 (!%p1241_p8), 1, %s1140_s27  }
  0x61   : > { %s787_s19 = sshll.u32 (!%p1241_p8), %s1382_s11, 4  ;;  %s285_s12 = scalar_lea.sflag (!%p1241_p8), [#allocation4], %s1382_s11 }
  0x62   : > { %s1386_s17 = scalar_lea.vmem (!%p1241_p8), [#allocation3], %s787_s19  ;;  %p1474_p4 = scmp.ne.s32.totalorder (!%p1241_p8), %s1467_s8, 0 }
  0x67   : > { %1123 = dma.done.wait (%p1474_p4), %s285_s12, 256  }
  0x68   : > { %1125 = vsyncadd (%p1474_p4), %s285_s12, 4294967040  ;;  %p1475_p5 = scmp.eq.s32.totalorder %s1222_s6, 0 }
  0x6a   : > { %1127 = dma.done.wait (%p1475_p5), [#allocation7], 2048   ;;  %p1476_p8 = pmov %p1475_p5 }
  0x6b   : > { %v974_v0 = vld [vmem:[#allocation6] sm:$0xff]   ;;  %v975_v1 = vld [vmem:[#allocation6 + $0x8] sm:$0xff]   ;;  %v976_v2 = vld [vmem:[#allocation6 + $0x10] sm:$0xff]   ;;  %v1155_v45 = vmov 0.0   ;;  %vm1156_vm0 = vmmov 0   ;;  %s675_s23 = sld [smem:[#allocation2]] }
  0x6c   : > { %1129 = vsyncadd (%p1476_p8), [#allocation7], 4294965248  ;;  %843 = vmatprep.subr.bf16.mxu0 %v974_v0  ;;  %v977_v3 = vld [vmem:[#allocation6 + $0x18] sm:$0xff]   ;;  %v982_v4 = vld [vmem:[%s1386_s17] sm:$0xff]   ;;  %s810_s30 = sshll.u32 %s1222_s6, 4  ;;  %s325_s18 = scalar_lea.vmem [#allocation9], %s1382_s11 }
  0x6d   : > { %844 = vmatpush3.bf16.msra.mxu0 %v974_v0  ;;  %859 = vmatprep.mubr.bf16.mxu0 %v982_v4  ;;  %v984_v5 = vld [vmem:[#allocation8] sm:$0xff]   ;;  %v985_v6 = vld [vmem:[#allocation8 + $0x8] sm:$0xff]   ;;  %v986_v8 = vld [vmem:[#allocation8 + $0x10] sm:$0xff]   ;;  %s693_s15 = sshll.u32 %s325_s18, 4  ;;  %vm678_vm1 = vcmask 253952   ;;  %s1412_s12 = scalar_lea.hbm %s1463_s7, %s810_s30  ;;  %s1414_s15 = int_to_ptr.vmem [resolvable:$true] %s693_s15 }
  0x6e   : > { %845 = vmatprep.subr.bf16.mxu0 %v975_v1  ;;  %v978_v7 = vld [vmem:[#allocation6 + $0x20] sm:$0xff]   ;;  %863 = vmatprep.subr.bf16.mxu1 %v984_v5  ;;  %v979_v9 = vld [vmem:[#allocation6 + $0x28] sm:$0xff]   ;;  %v987_v10 = vld [vmem:[#allocation8 + $0x18] sm:$0xff]   ;;  %s681_s6 = scalar_lea.sflag [#allocation5], %s1382_s11  ;;  %p1477_p0 = scmp.ne.s32.totalorder %s1472_s14, 0 }
  0x6f   : > { %864 = vmatpush3.bf16.msra.mxu1 %v984_v5  ;;  %v980_v11 = vld [vmem:[#allocation6 + $0x30] sm:$0xff]   ;;  %v988_v12 = vld [vmem:[#allocation8 + $0x20] sm:$0xff]   ;;  %v981_v13 = vld [vmem:[#allocation6 + $0x38] sm:$0xff]   ;;  %s1157_s8 = smov [#allocation9]  }
  0x70   : > { %865 = vmatprep.subr.bf16.mxu1 %v985_v6  ;;  %v989_v14 = vld [vmem:[#allocation8 + $0x28] sm:$0xff]   ;;  %v990_v16 = vld [vmem:[#allocation8 + $0x30] sm:$0xff]   ;;  %v991_v17 = vld [vmem:[#allocation8 + $0x38] sm:$0xff]   ;;  %s1082_s10 = sshll.u32 %s1157_s8, 4  ;;  %s1083_s10 = int_to_ptr.vmem [resolvable:$false] %s1082_s10 }
  0x71   : > { %846 = vmatpush3.bf16.msra.mxu0 %v975_v1  ;;  %v983_v15 = vld [vmem:[%s1386_s17 + $0x8] sm:$0xff]   ;;  %v790_v18 = vld [vmem:[%s1458_s2] ss:$0 sm:$0xff]  ;;  %s1078_s17 = scalar_lea.vmem %s1414_s15, 16  ;;  %s1084_s24 = scalar_lea.vmem %s1083_s10, 32 }
  0x72   : > { %847 = vmatprep.subr.bf16.mxu0 %v976_v2  ;;  %v801_v33 = vld [vmem:[%s1460_s4] ss:$0 sm:$0xff]  ;;  %p1079_p11 = scmp.ne.s32.totalorder %s1414_s15, %s1078_s17  ;;  %p1085_p7 = scmp.lt.s32.totalorder %s1414_s15, %s1083_s10 }
  0x73   : > { %866 = vmatpush3.bf16.msra.mxu1 %v985_v6  ;;  %p1086_p9 = scmp.lt.s32.totalorder %s1084_s24, %s1078_s17 }
  0x74   : > { %867 = vmatprep.subr.bf16.mxu1 %v986_v8  ;;  %p1080_p2 = pnand %p1079_p11, %p1477_p0 }
  0x75   : > { %848 = vmatpush3.bf16.msra.mxu0 %v976_v2  ;;  %p1087_p12 = por %p1086_p9, %p1085_p7 }
  0x76   : > { %849 = vmatprep.subr.bf16.mxu0 %v977_v3  ;;  %p1081_p3 = pneg %p1080_p2 }
  0x77   : > { %868 = vmatpush3.bf16.msra.mxu1 %v986_v8  ;;  %v676_v8 = vstv %s675_s23 }
  0x78   : > { %869 = vmatprep.subr.bf16.mxu1 %v987_v10  ;;  %p1088_p1 = pnand %p1087_p12, %p1081_p3 }
  0x79   : > { %850 = vmatpush3.bf16.msra.mxu0 %v977_v3 }
  0x7a   : > { %851 = vmatprep.subr.bf16.mxu0 %v978_v7 }
  0x7b   : > { %870 = vmatpush3.bf16.msra.mxu1 %v987_v10 }
  0x7c   : > { %871 = vmatprep.subr.bf16.mxu1 %v988_v12 }
  0x7d   : > { %852 = vmatpush3.bf16.msra.mxu0 %v978_v7  ;;  %v634_v7 = vld [vmem:[%s1461_s5] sm:$0xf] }
  0x7e   : > { %853 = vmatprep.subr.bf16.mxu0 %v979_v9 }
  0x7f   : > { %872 = vmatpush3.bf16.msra.mxu1 %v988_v12 }
  0x80   : > { %873 = vmatprep.subr.bf16.mxu1 %v989_v14 }
  0x81   : > { %854 = vmatpush3.bf16.msra.mxu0 %v979_v9 }
  0x82   : > { %855 = vmatprep.subr.bf16.mxu0 %v980_v11 }
  0x83   : > { %874 = vmatpush3.bf16.msra.mxu1 %v989_v14 }
  0x84   : > { %875 = vmatprep.subr.bf16.mxu1 %v990_v16 }
  0x85   : > { %856 = vmatpush3.bf16.msra.mxu0 %v980_v11 }
  0x86   : > { %857 = vmatprep.subr.bf16.mxu0 %v981_v13 }
  0x87   : > { %876 = vmatpush3.bf16.msra.mxu1 %v990_v16 }
  0x88   : > { %877 = vmatprep.subr.bf16.mxu1 %v991_v17 }
  0x89   : > { %858 = vmatpush3.bf16.msra.mxu0 %v981_v13 }
  0x8a   : > { %883 = vmatprep.subr.bf16.mxu0 %v1155_v45 }
  0x8b   : > { %878 = vmatpush3.bf16.msra.mxu1 %v991_v17 }
  0x8c   : > { %860 = vmatmul.mubr.bf16.vlgmr.msra.gmra.mrb[0].mxu0 %v983_v15 }
  0x8d   : > { %899 = vmatprep.mubr.msk.bf16.mxu0 %vm1156_vm0, %v1155_v45 }
 0x15f   : > { %v861_v19 = vpop.f32.mrb[0].mxu0 }
 0x160   : > { %v458_v20 = vadd.f32 %v861_v19, %v790_v18  ;;  %v449_v21 = vpop.f32.mrb[1].mxu0 }
 0x161   : > { %v450_v22 = vadd.f32 %v790_v18, %v449_v21  ;;  %v862_v23 = vpop.f32.mrb[2].mxu0 }
 0x162   : > { %v461_v24 = vadd.f32 %v862_v23, %v790_v18  ;;  %v452_v25 = vpop.f32.mrb[3].mxu0  ;;  %v466_v27 = vmax.f32 %v458_v20, 0.0 }
 0x163   : > { %v453_v26 = vadd.f32 %v790_v18, %v452_v25  ;;  %v464_v29 = vmax.f32 %v450_v22, 0.0 }
 0x164   : > { %v467_v28 = vmax.f32 %v461_v24, 0.0 }
 0x165   : > { %v465_v30 = vmax.f32 %v453_v26, 0.0 }
 0x166   : > { %v469_v31 = vpack.c.bf16 %v467_v28, %v466_v27 }
 0x167   : > { %v468_v32 = vpack.c.bf16 %v465_v30, %v464_v29 }
 0x169   : > { %879 = vmatprep.mubr.bf16.mxu1 %v468_v32 }
 0x16a   : > { %880 = vmatmul.mubr.bf16.vlgmr.msra.gmra.mrb[0].mxu1 %v469_v31 }
 0x23d   : > { %v881_v34 = vpop.f32.mrb[0].mxu1 }
 0x23e   : > { %v575_v35 = vpop.f32.mrb[1].mxu1  ;;  %v584_v41 = vadd.f32 %v881_v34, %v801_v33 }
 0x23f   : > { %v882_v36 = vpop.f32.mrb[2].mxu1  ;;  %v576_v37 = vadd.f32 %v801_v33, %v575_v35 }
 0x240   : > { %v578_v38 = vpop.f32.mrb[3].mxu1  ;;  %v592_v43 = vmax.f32 %v584_v41, 0.0  ;;  %v587_v44 = vadd.f32 %v882_v36, %v801_v33 }
 0x241   : > { %v579_v39 = vadd.f32 %v801_v33, %v578_v38  ;;  %v590_v40 = vmax.f32 %v576_v37, 0.0 }
 0x242   : > { %v593_v46 = vmax.f32 %v587_v44, 0.0 }
 0x243   : > { %594 = vxpose.xlu0.b32.start [1/4] (short) %v590_v40, 128  ;;  %v591_v42 = vmax.f32 %v579_v39, 0.0 }
 0x247   : > { %595 = vxpose.xlu0.b32.cont [2/4] (short) %v591_v42, 128 }
 0x24b   : > { %596 = vxpose.xlu0.b32.cont [3/4] (short) %v592_v43, 128 }
 0x24f   : > { %597 = vxpose.xlu0.b32.end [4/4] (short) %v593_v46, 128 }
 0x2c3   : > { %v610_v47 = vpop.trf.xlu0 }
 0x2c7   : > { %v611_v48 = vpop.trf.xlu0 }
 0x2c8   : > { %v626_v49 = vpack.c.bf16 %v611_v48, %v610_v47 }
 0x2ca   : > { %884 = vmatpush3.bf16.msra.mxu0 %v626_v49 }
 0x2cb   : > { %v612_v50 = vpop.trf.xlu0  ;;  %885 = vmatprep.subr.bf16.mxu0 %v1155_v45 }
 0x2cf   : > { %v613_v51 = vpop.trf.xlu0 }
 0x2d0   : > { %v627_v52 = vpack.c.bf16 %v613_v51, %v612_v50 }
 0x2d2   : > { %886 = vmatpush3.bf16.msra.mxu0 %v627_v52 }
 0x2d3   : > { %v614_v53 = vpop.trf.xlu0  ;;  %887 = vmatprep.subr.bf16.mxu0 %v1155_v45 }
 0x2d7   : > { %v615_v54 = vpop.trf.xlu0 }
 0x2d8   : > { %v628_v55 = vpack.c.bf16 %v615_v54, %v614_v53 }
 0x2da   : > { %888 = vmatpush3.bf16.msra.mxu0 %v628_v55 }
 0x2db   : > { %v616_v56 = vpop.trf.xlu0  ;;  %889 = vmatprep.subr.bf16.mxu0 %v1155_v45 }
 0x2df   : > { %v617_v57 = vpop.trf.xlu0 }
 0x2e0   : > { %v629_v58 = vpack.c.bf16 %v617_v57, %v616_v56 }
 0x2e2   : > { %890 = vmatpush3.bf16.msra.mxu0 %v629_v58 }
 0x2e3   : > { %v618_v59 = vpop.trf.xlu0  ;;  %891 = vmatprep.subr.bf16.mxu0 %v1155_v45 }
 0x2e7   : > { %v619_v60 = vpop.trf.xlu0 }
 0x2e8   : > { %v630_v61 = vpack.c.bf16 %v619_v60, %v618_v59 }
 0x2ea   : > { %892 = vmatpush3.bf16.msra.mxu0 %v630_v61 }
 0x2eb   : > { %v620_v62 = vpop.trf.xlu0  ;;  %893 = vmatprep.subr.bf16.mxu0 %v1155_v45 }
 0x2ef   : > { %v621_v63 = vpop.trf.xlu0 }
 0x2f0   : > { %v631_v0 = vpack.c.bf16 %v621_v63, %v620_v62 }
 0x2f2   : > { %894 = vmatpush3.bf16.msra.mxu0 %v631_v0 }
 0x2f3   : > { %v622_v1 = vpop.trf.xlu0  ;;  %895 = vmatprep.subr.bf16.mxu0 %v1155_v45 }
 0x2f7   : > { %v623_v2 = vpop.trf.xlu0 }
 0x2f8   : > { %v632_v3 = vpack.c.bf16 %v623_v2, %v622_v1 }
 0x2fa   : > { %896 = vmatpush3.bf16.msra.mxu0 %v632_v3 }
 0x2fb   : > { %v624_v4 = vpop.trf.xlu0  ;;  %897 = vmatprep.subr.bf16.mxu0 %v1155_v45 }
 0x2ff   : > { %v625_v5 = vpop.trf.xlu0 }
 0x300   : > { %v633_v6 = vpack.c.bf16 %v625_v5, %v624_v4 }
 0x302   : > { %898 = vmatpush3.bf16.msra.mxu0 %v633_v6 }
 0x305   : > { %900 = vmatmul.mubr.bf16.vlgmr.msra.gmra.mrb[4].mxu0 %v634_v7 }
 0x3d8   : > { %v669_v9 = vpop.f32.mrb[4].mxu0 }
 0x3d9   : > { %v677_v10 = vadd.f32 %v676_v8, %v669_v9  ;;  %v901_v11 = vpop.f32.mrb[5].mxu0 }
 0x3da   : > { %v672_v12 = vpop.f32.mrb[6].mxu0 }
 0x3db   : > { %v902_v13 = vpop.f32.mrb[7].mxu0  ;;  %679 = vst.msk [vmem:[%s325_s18] sm:$0x1] %vm678_vm1, %v677_v10 }
 0x3dc   : > { %1091 = shalt.err (!%p1088_p1)
}
 0x3dd   : > { %s1092_s11 = scalar_lea.hbm %s1412_s12, 16  ;;  %s1096_s22 = scalar_lea.hbm %s1463_s7, 32 }
 0x3de   : > { %p1093_p13 = scmp.ne.s32.totalorder %s1412_s12, %s1092_s11  ;;  %p1097_p4 = scmp.lt.u32.totalorder %s1412_s12, %s1463_s7 }
 0x3df   : > { %p1098_p5 = scmp.lt.u32.totalorder %s1096_s22, %s1092_s11  ;;  %p1100_p11 = scmp.lt.u32.totalorder %s1092_s11, %s1412_s12 }
 0x3e0   : > { %p1094_p6 = pnand %p1093_p13, %p1477_p0 }
 0x3e1   : > { %p1099_p8 = por %p1098_p5, %p1097_p4 }
 0x3e2   : > { %p1095_p10 = pneg %p1094_p6 }
 0x3e3   : > { %p1101_p2 = por %p1100_p11, %p1099_p8 }
 0x3e5   : > { %p1102_p3 = pnand %p1101_p2, %p1095_p10 }
 0x3e7   : > { %1105 = shalt.err (!%p1102_p3)
}
 0x3e8   : > { %913 = dma.vmem_to_hbm [thread:$0]  (%p1477_p0), %s1414_s15, 16, %s1412_s12, %s681_s6  }
 0x3e9 PF: > { %s705_s18 = sand.u32 1, %s1136_s26   ;;  %p1478_p7 = scmp.ne.s32.totalorder %s1468_s9, 0 }
 0x3ea   : > { %p1479_p9 = scmp.ge.s32.totalorder %s1148_s29, 2  ;;  %s706_s20 = scalar_lea.sflag [#allocation5], %s705_s18 }
 0x3ec   : > { %p927_p12 = pnand %p1479_p9, %p1478_p7 }
 0x3ee   : > { %1131 = dma.done.wait (!%p927_p12), %s706_s20, 16  }
 0x3ef   : > { %1133 = vsyncadd (!%p927_p12), %s706_s20, 4294967280  ;;  %p22_p1 = scmp.ge.s32.totalorder %s1317_s13, 4   ;;  %s1480_s26 = smov %s1140_s27 }
 0x3f0   : > { %s1481_s27 = smov %s1144_s28  ;;  %s1482_s28 = smov %s1333_s16 }
 0x3f1   : > { %s1483_s29 = smov %s1317_s13  ;;  %24 = sbr.rel (!%p22_p1) target bundleno = 8 (0x8), region = 101 }
 0x3f8   :  { %710 = vsyncpa [#allocation4], 1 }
 0x3f9   :  { %712 = vsyncpa [#allocation4 + $0x1], 1 }
 0x3fa   :  { %713 = vsyncpa [#allocation7], 1 }
 0x3fb   :  { %714 = vsyncpa [#allocation5], 1 }
 0x3fc   :  { %716 = vsyncpa [#allocation5 + $0x1], 1 }

</bundles_post_ra>
